<compile_context>
chip_gen: v7x
topology: tpu7x:2x2x1
jax: 0.10.0
libtpu: 0.0.40
codegen_flags: <defaults>
</compile_context>

<pallas_src>
import jax
import jax.numpy as jnp
from jax.experimental import pallas as pl
from jax.experimental.pallas import tpu as pltpu

# Small, self-consistent shapes (module default was seq_len=18, hidden_emb=1024).
SEQ_LEN = 8      # self.seq_len
HIDDEN = 32      # self.hidden_emb == self.mlp2_units
T_TOTAL = 12     # total time steps in the input sequence (>= SEQ_LEN)
BATCH = 2
N_WIN = T_TOTAL - SEQ_LEN + 1  # number of sliding windows


def attention_kernel(xf_ref, x3_ref, w1_ref, b1_ref, w2_ref, b2_ref, out_ref):
    """All refs live fully in VMEM (shapes are small).

    xf_ref : (B, T*H)   f32  batch-first, time-flattened input
    x3_ref : (B, T, H)  f32  same data, 3-D view (for the weighted reduction)
    w1_ref : (S*H, H)   fc Linear #1 weight (in x out)
    b1_ref : (1, H)     fc Linear #1 bias
    w2_ref : (H, S)     fc Linear #2 weight (in x out)
    b2_ref : (1, S)     fc Linear #2 bias
    out_ref: (W*B, H)   window features, row = w*B + b
    """
    B, S, H, W = BATCH, SEQ_LEN, HIDDEN, N_WIN

    # ---- im2col: stack all sliding windows along the row (M) axis ----
    # Row w*B + b  ==  x[b, w:w+S, :].flatten()   (contiguous lane slice of xf)
    x_rows = jnp.concatenate(
        [xf_ref[:, i * H:(i + S) * H] for i in range(W)], axis=0)     # (W*B, S*H)
    cur = jnp.concatenate(
        [x3_ref[:, i:i + S, :] for i in range(W)], axis=0)            # (W*B, S, H)

    # ---- Linear 1 + ReLU : single MXU GEMM, K = S*H = 256 ----
    h = jnp.dot(x_rows, w1_ref[...], preferred_element_type=jnp.float32) + b1_ref[...]
    h = jnp.maximum(h, 0.0)
    # TODO(synk): nn.Dropout(p=0.5) is identity in eval mode; training-mode dropout not modeled.

    # ---- Linear 2 + ReLU : single MXU GEMM, K = H ----
    a = jnp.dot(h, w2_ref[...], preferred_element_type=jnp.float32) + b2_ref[...]
    a = jnp.maximum(a, 0.0)                                           # (W*B, S)

    # ---- Softmax over the window axis (lanes); approx reciprocal -> EUP slot ----
    a_max = jnp.max(a, axis=-1, keepdims=True)
    e = jnp.exp(a - a_max)
    alpha = e * pl.reciprocal(jnp.sum(e, axis=-1, keepdims=True), approx=True)

    # ---- Weighted sum over the window: multiply + sublane (XLU) reduce ----
    feat = jnp.sum(cur * alpha[:, :, None], axis=1)                   # (W*B, H)

    # ---- Single store of all window features at once ----
    out_ref[...] = feat.astype(out_ref.dtype)


def attention_forward(lstm_emd, w1, b1, w2, b2):
    """lstm_emd: (T, B, H) seq-first, like the PyTorch module's input."""
    T, B, H = lstm_emd.shape
    S = SEQ_LEN
    W = T - S + 1

    x = jnp.transpose(lstm_emd, (1, 0, 2))          # (B, T, H)
    x_flat = x.reshape(B, T * H)                    # (B, T*H)

    vmem = pl.BlockSpec(memory_space=pltpu.MemorySpace.VMEM)
    feats = pl.pallas_call(
        attention_kernel,
        out_shape=jax.ShapeDtypeStruct((W * B, H), x.dtype),
        in_specs=[vmem] * 6,
        out_specs=vmem,
    )(x_flat, x, w1, b1.reshape(1, -1), w2, b2.reshape(1, -1))

    # direct_emd prefix (first S-1 steps) is untouched input: concat in plain
    # JAX instead of copying it through the kernel. feats row order w*B + b
    # reshapes directly into seq-first (W, B, H).
    feats = feats.reshape(W, B, H)
    return jnp.concatenate([lstm_emd[: S - 1], feats], axis=0)        # (T, B, H)


def reference_forward(lstm_emd, w1, b1, w2, b2):
    """Pure-JAX reference mirroring the PyTorch forward (eval mode)."""
    x = jnp.transpose(lstm_emd, (1, 0, 2))
    B, T, H = x.shape
    S = SEQ_LEN
    pieces = [x[:, : S - 1]]
    for i in range(T - S + 1):
        cur = x[:, i : i + S]
        flat = cur.reshape(B, -1)
        h = jnp.maximum(flat @ w1 + b1, 0.0)
        a = jnp.maximum(h @ w2 + b2, 0.0)
        alpha = jax.nn.softmax(a, axis=1)
        feat = jnp.sum(cur * alpha[:, :, None], axis=1, keepdims=True)
        pieces.append(feat)
    out = jnp.concatenate(pieces, axis=1)
    return jnp.transpose(out, (1, 0, 2))


if __name__ == "__main__":
    key = jax.random.PRNGKey(0)
    k_x, k_w1, k_b1, k_w2, k_b2 = jax.random.split(key, 5)

    # Input: (T, B, H) seq-first, matching the module's expected layout.
    lstm_emd = jax.random.normal(k_x, (T_TOTAL, BATCH, HIDDEN), dtype=jnp.float32)

    # Deterministic parameter init (PyTorch Linear shapes: fc = Linear(S*H -> H), Linear(H -> S)).
    # Stored pre-transposed as (in_features, out_features) so the kernel does x @ W.
    fan1 = SEQ_LEN * HIDDEN
    fan2 = HIDDEN
    w1 = jax.random.uniform(k_w1, (fan1, HIDDEN), jnp.float32, -1.0, 1.0) / jnp.sqrt(fan1)
    b1 = jax.random.uniform(k_b1, (HIDDEN,), jnp.float32, -1.0, 1.0) / jnp.sqrt(fan1)
    w2 = jax.random.uniform(k_w2, (HIDDEN, SEQ_LEN), jnp.float32, -1.0, 1.0) / jnp.sqrt(fan2)
    b2 = jax.random.uniform(k_b2, (SEQ_LEN,), jnp.float32, -1.0, 1.0) / jnp.sqrt(fan2)

    out = attention_forward(lstm_emd, w1, b1, w2, b2)
    out = jax.block_until_ready(out)

    ref = reference_forward(lstm_emd, w1, b1, w2, b2)
    assert out.shape == (T_TOTAL, BATCH, HIDDEN), out.shape
    # Tolerance loosened slightly for pl.reciprocal(approx=True) in the softmax.
    assert jnp.allclose(out, ref, atol=2e-3, rtol=2e-3), float(jnp.max(jnp.abs(out - ref)))

    print("KERNEL_OK")
</pallas_src>

<mosaic_0001>
module attributes {stable_mosaic.version = 11 : i64} {
  func.func @attention_kernel(%arg0: memref<2x384xf32, #tpu.memory_space<vmem>>, %arg1: memref<2x12x32xf32, #tpu.memory_space<vmem>>, %arg2: memref<256x32xf32, #tpu.memory_space<vmem>>, %arg3: memref<1x32xf32, #tpu.memory_space<vmem>>, %arg4: memref<32x8xf32, #tpu.memory_space<vmem>>, %arg5: memref<1x8xf32, #tpu.memory_space<vmem>>, %arg6: memref<10x32xf32, #tpu.memory_space<vmem>>) attributes {dimension_semantics = [], scalar_prefetch = 0 : i64, scratch_operands = 0 : i64, tpu.core_type = #tpu.core_type<tc>} {
    %c0 = arith.constant 0 : index
    %c0_0 = arith.constant 0 : index
    %0 = vector.load %arg0[%c0, %c0_0] : memref<2x384xf32, #tpu.memory_space<vmem>>, vector<2x256xf32>
    %c0_1 = arith.constant 0 : index
    %c32 = arith.constant 32 : index
    %1 = vector.load %arg0[%c0_1, %c32] : memref<2x384xf32, #tpu.memory_space<vmem>>, vector<2x256xf32>
    %c0_2 = arith.constant 0 : index
    %c64 = arith.constant 64 : index
    %2 = vector.load %arg0[%c0_2, %c64] : memref<2x384xf32, #tpu.memory_space<vmem>>, vector<2x256xf32>
    %c0_3 = arith.constant 0 : index
    %c96 = arith.constant 96 : index
    %3 = vector.load %arg0[%c0_3, %c96] : memref<2x384xf32, #tpu.memory_space<vmem>>, vector<2x256xf32>
    %c0_4 = arith.constant 0 : index
    %c128 = arith.constant 128 : index
    %4 = vector.load %arg0[%c0_4, %c128] : memref<2x384xf32, #tpu.memory_space<vmem>>, vector<2x256xf32>
    %5 = tpu.concatenate %0, %1, %2, %3, %4 in 0 : vector<2x256xf32>, vector<2x256xf32>, vector<2x256xf32>, vector<2x256xf32>, vector<2x256xf32> -> vector<10x256xf32>
    %c0_5 = arith.constant 0 : index
    %c0_6 = arith.constant 0 : index
    %c0_7 = arith.constant 0 : index
    %6 = vector.load %arg1[%c0_5, %c0_6, %c0_7] : memref<2x12x32xf32, #tpu.memory_space<vmem>>, vector<2x8x32xf32>
    %c0_8 = arith.constant 0 : index
    %c1 = arith.constant 1 : index
    %c0_9 = arith.constant 0 : index
    %7 = vector.load %arg1[%c0_8, %c1, %c0_9] : memref<2x12x32xf32, #tpu.memory_space<vmem>>, vector<2x8x32xf32>
    %c0_10 = arith.constant 0 : index
    %c2 = arith.constant 2 : index
    %c0_11 = arith.constant 0 : index
    %8 = vector.load %arg1[%c0_10, %c2, %c0_11] : memref<2x12x32xf32, #tpu.memory_space<vmem>>, vector<2x8x32xf32>
    %c0_12 = arith.constant 0 : index
    %c3 = arith.constant 3 : index
    %c0_13 = arith.constant 0 : index
    %9 = vector.load %arg1[%c0_12, %c3, %c0_13] : memref<2x12x32xf32, #tpu.memory_space<vmem>>, vector<2x8x32xf32>
    %c0_14 = arith.constant 0 : index
    %c4 = arith.constant 4 : index
    %c0_15 = arith.constant 0 : index
    %10 = vector.load %arg1[%c0_14, %c4, %c0_15] : memref<2x12x32xf32, #tpu.memory_space<vmem>>, vector<2x8x32xf32>
    %11 = tpu.concatenate %6, %7, %8, %9, %10 in 0 : vector<2x8x32xf32>, vector<2x8x32xf32>, vector<2x8x32xf32>, vector<2x8x32xf32>, vector<2x8x32xf32> -> vector<10x8x32xf32>
    %c0_16 = arith.constant 0 : index
    %c0_17 = arith.constant 0 : index
    %12 = vector.load %arg2[%c0_16, %c0_17] : memref<256x32xf32, #tpu.memory_space<vmem>>, vector<256x32xf32>
    %cst = arith.constant dense<0.000000e+00> : vector<10x32xf32>
    %13 = tpu.matmul %5, %12, %cst {dimension_numbers = #tpu.dot_dimension_numbers<[1], [0], [0], [1], [0, 0, 1, 1], [], []>} : vector<10x256xf32>, vector<256x32xf32>, vector<10x32xf32> -> vector<10x32xf32>
    %c0_18 = arith.constant 0 : index
    %c0_19 = arith.constant 0 : index
    %14 = vector.load %arg3[%c0_18, %c0_19] : memref<1x32xf32, #tpu.memory_space<vmem>>, vector<1x32xf32>
    %15 = vector.broadcast %14 : vector<1x32xf32> to vector<10x32xf32>
    %16 = arith.addf %13, %15 : vector<10x32xf32>
    %cst_20 = arith.constant 0.000000e+00 : f32
    %17 = vector.broadcast %cst_20 : f32 to vector<10x32xf32>
    %18 = arith.maximumf %16, %17 : vector<10x32xf32>
    %c0_21 = arith.constant 0 : index
    %c0_22 = arith.constant 0 : index
    %19 = vector.load %arg4[%c0_21, %c0_22] : memref<32x8xf32, #tpu.memory_space<vmem>>, vector<32x8xf32>
    %cst_23 = arith.constant dense<0.000000e+00> : vector<10x8xf32>
    %20 = tpu.matmul %18, %19, %cst_23 {dimension_numbers = #tpu.dot_dimension_numbers<[1], [0], [0], [1], [0, 0, 1, 1], [], []>} : vector<10x32xf32>, vector<32x8xf32>, vector<10x8xf32> -> vector<10x8xf32>
    %c0_24 = arith.constant 0 : index
    %c0_25 = arith.constant 0 : index
    %21 = vector.load %arg5[%c0_24, %c0_25] : memref<1x8xf32, #tpu.memory_space<vmem>>, vector<1x8xf32>
    %22 = vector.broadcast %21 : vector<1x8xf32> to vector<10x8xf32>
    %23 = arith.addf %20, %22 : vector<10x8xf32>
    %cst_26 = arith.constant 0.000000e+00 : f32
    %24 = vector.broadcast %cst_26 : f32 to vector<10x8xf32>
    %25 = arith.maximumf %23, %24 : vector<10x8xf32>
    %cst_27 = arith.constant dense<0xFF800000> : vector<10xf32>
    %26 = vector.multi_reduction <maximumf>, %25, %cst_27 [1] : vector<10x8xf32> to vector<10xf32>
    %27 = vector.shape_cast %26 : vector<10xf32> to vector<10x1xf32>
    %28 = vector.broadcast %27 : vector<10x1xf32> to vector<10x8xf32>
    %29 = arith.subf %25, %28 : vector<10x8xf32>
    %30 = math.exp %29 : vector<10x8xf32>
    %cst_28 = arith.constant dense<0.000000e+00> : vector<10xf32>
    %31 = vector.multi_reduction <add>, %30, %cst_28 [1] : vector<10x8xf32> to vector<10xf32>
    %32 = vector.shape_cast %31 : vector<10xf32> to vector<10x1xf32>
    %33 = tpu.reciprocal %32 {approx = true} : vector<10x1xf32> -> vector<10x1xf32>
    %34 = vector.broadcast %33 : vector<10x1xf32> to vector<10x8xf32>
    %35 = arith.mulf %30, %34 : vector<10x8xf32>
    %36 = vector.shape_cast %35 : vector<10x8xf32> to vector<10x8x1xf32>
    %37 = vector.broadcast %36 : vector<10x8x1xf32> to vector<10x8x32xf32>
    %38 = arith.mulf %11, %37 : vector<10x8x32xf32>
    %cst_29 = arith.constant dense<0.000000e+00> : vector<10x32xf32>
    %39 = vector.multi_reduction <add>, %38, %cst_29 [1] : vector<10x8x32xf32> to vector<10x32xf32>
    %c0_30 = arith.constant 0 : index
    %c0_31 = arith.constant 0 : index
    %40 = vector.load %arg6[%c0_30, %c0_31] : memref<10x32xf32, #tpu.memory_space<vmem>>, vector<10x32xf32>
    tpu.vector_store %arg6[%c0_30, %c0_31], %39 {strides = array<i32>} : memref<10x32xf32, #tpu.memory_space<vmem>>, vector<10x32xf32>,
    return
  }
}

</mosaic_0001>

<bundles_post_ra>
// kernel: tpu_custom_call.1
= control target key start
LH: loop header
LB: loop body
LE: loop exit
PB: predicated region body
PF: predicated region fallthrough
CT: control target
= control target key end

     0   :  { %v43_v1 = vlaneseq  ;;  %v716_v2 = vmov 1983009808   ;;  %s717_s27 = smov 96   ;;  %s958_s0 = inlined_call_operand.vmem [shape: f32[2,384], index: 0, kind: input, shape index: {}]   ;;  %s959_s1 = inlined_call_operand.vmem [shape: f32[2,12,32], index: 1, kind: input, shape index: {}]   ;;  %s960_s2 = inlined_call_operand.vmem [shape: f32[256,32], index: 2, kind: input, shape index: {}]   ;;  %s961_s3 = inlined_call_operand.vmem [shape: f32[1,32], index: 3, kind: input, shape index: {}]   ;;  %s962_s4 = inlined_call_operand.vmem [shape: f32[32,8], index: 4, kind: input, shape index: {}]   ;;  %s963_s5 = inlined_call_operand.vmem [shape: f32[1,8], index: 5, kind: input, shape index: {}]   ;;  %s964_s6 = inlined_call_operand.hbm [shape: f32[10,32], index: 6, kind: output, shape index: {}]  }
   0x1   :  { %v25_v0 = vld [vmem:[%s958_s0] sm:$0x3f]  ;;  %v41_v3 = vunpack.c.l.s4 %v716_v2  ;;  %v146_v5 = vld [vmem:[%s960_s2 + $0x88] sm:$0xff]  ;;  %v147_v11 = vld [vmem:[%s960_s2 + $0x90] sm:$0xff] }
   0x2   :  { %v145_v4 = vld [vmem:[%s960_s2 + $0x80] sm:$0xff]  ;;  %v39_v7 = vcombine.low %v25_v0, %v25_v0  ;;  %v770_v8 = vshrl.u32 %v43_v1, 7  ;;  %v130_v10 = vld [vmem:[%s960_s2 + $0x8] sm:$0xff]  ;;  %v148_v12 = vld [vmem:[%s960_s2 + $0x98] sm:$0xff]  ;;  %v66_v14 = vcombine.high %v25_v0, %v25_v0 }
   0x3   :  { %v129_v6 = vld [vmem:[%s960_s2] sm:$0xff]  ;;  %v620_v9 = vpack.c.bf16 %v146_v5, %v145_v4  ;;  %v42_v13 = vunpack.c.0.s8 %v41_v3  ;;  %v624_v16 = vpack.c.bf16 %v148_v12, %v147_v11  ;;  %v131_v17 = vld [vmem:[%s960_s2 + $0x10] sm:$0xff]  ;;  %v132_v18 = vld [vmem:[%s960_s2 + $0x18] sm:$0xff] }
   0x4   :  { %v622_v15 = vpack.c.bf16 %v130_v10, %v129_v6  ;;  %v149_v19 = vld [vmem:[%s960_s2 + $0xa0] sm:$0xff]  ;;  %v150_v20 = vld [vmem:[%s960_s2 + $0xa8] sm:$0xff]  ;;  %v626_v22 = vpack.c.bf16 %v132_v18, %v131_v17  ;;  %v151_v29 = vld [vmem:[%s960_s2 + $0xb0] sm:$0xff] }
   0x5   :  { %621 = vmatprep.subr.bf16.mxu0 %v620_v9  ;;  %v45_v21 = vsub.s32 %v42_v13, %v770_v8  ;;  %v628_v26 = vpack.c.bf16 %v150_v20, %v149_v19  ;;  %v133_v27 = vld [vmem:[%s960_s2 + $0x20] sm:$0xff]  ;;  %v134_v28 = vld [vmem:[%s960_s2 + $0x28] sm:$0xff]  ;;  %v152_v30 = vld [vmem:[%s960_s2 + $0xb8] sm:$0xff] }
   0x6   :  { %623 = vmatpush3.bf16.msra.mxu0 %v622_v15  ;;  %v630_v34 = vpack.c.bf16 %v134_v28, %v133_v27  ;;  %v632_v37 = vpack.c.bf16 %v152_v30, %v151_v29  ;;  %v135_v38 = vld [vmem:[%s960_s2 + $0x30] sm:$0xff]  ;;  %v136_v39 = vld [vmem:[%s960_s2 + $0x38] sm:$0xff]  ;;  %v153_v40 = vld [vmem:[%s960_s2 + $0xc0] sm:$0xff] }
   0x7   :  { %625 = vmatprep.subr.bf16.mxu0 %v624_v16  ;;  %v46_v23 = vrot.slane %v39_v7, %v45_v21  ;;  %v53_v24 = vrot.slane %v25_v0, %v45_v21  ;;  %v73_v25 = vrot.slane %v66_v14, %v45_v21  ;;  %v154_v41 = vld [vmem:[%s960_s2 + $0xc8] sm:$0xff] }
   0x9   :  { %55 = vrot.lane.b32.xlu0 %v46_v23, %s717_s27  ;;  %v75_v31 = vcombine.low %v73_v25, %v73_v25  ;;  %v54_v32 = vcombine.high %v46_v23, %v46_v23  ;;  %v74_v33 = vcombine.low %v53_v24, %v53_v24 }
   0xa   :  { %627 = vmatpush3.bf16.msra.mxu0 %v626_v22 }
   0xb   :  { %v672_v35 = vpack.i.bf16 %v75_v31, %v53_v24  ;;  %v667_v36 = vpack.i.bf16 %v53_v24, %v54_v32  ;;  %629 = vmatprep.subr.bf16.mxu0 %v628_v26 }
   0xc   :  { %11 = vsyncpa [#allocation3], 0  ;;  %s718_s12 = smov 64   ;;  %v677_v42 = vpack.i.bf16 %v74_v33, %v46_v23  ;;  %v634_v43 = vpack.c.bf16 %v136_v39, %v135_v38  ;;  %v636_v44 = vpack.c.bf16 %v154_v41, %v153_v40  ;;  %v137_v45 = vld [vmem:[%s960_s2 + $0x40] sm:$0xff]  ;;  %v138_v46 = vld [vmem:[%s960_s2 + $0x48] sm:$0xff]  ;;  %s719_s21 = smov 32   ;;  %v87_v49 = vcombine.low %v46_v23, %v46_v23 }
   0xd   :  { %673 = vrot.lane.b32.xlu1 %v672_v35, %s718_s12  ;;  %668 = vrot.lane.b32.xlu0 %v667_v36, %s717_s27  ;;  %v155_v47 = vld [vmem:[%s960_s2 + $0xd0] sm:$0xff]  ;;  %v156_v48 = vld [vmem:[%s960_s2 + $0xd8] sm:$0xff]  ;;  %v638_v50 = vpack.c.bf16 %v138_v46, %v137_v45  ;;  %vm61_vm0 = vcmask 785408   ;;  %vm82_vm1 = vcmask 523264   ;;  %vm110_vm2 = vcmask 1041408  }
   0xe   :  { %631 = vmatpush3.bf16.msra.mxu0 %v630_v34  ;;  %v640_v51 = vpack.c.bf16 %v156_v48, %v155_v47  ;;  %v139_v52 = vld [vmem:[%s960_s2 + $0x50] sm:$0xff]  ;;  %v140_v53 = vld [vmem:[%s960_s2 + $0x58] sm:$0xff]  ;;  %v157_v54 = vld [vmem:[%s960_s2 + $0xe0] sm:$0xff]  ;;  %vm94_vm3 = vcmask 261120   ;;  %vm113_vm4 = vcmask 1043456   ;;  %vm116_vm5 = vcmask 1045504  }
   0xf   :  { %633 = vmatprep.subr.bf16.mxu0 %v632_v37  ;;  %v158_v55 = vld [vmem:[%s960_s2 + $0xe8] sm:$0xff]  ;;  %v642_v56 = vpack.c.bf16 %v140_v53, %v139_v52  ;;  %v141_v58 = vld [vmem:[%s960_s2 + $0x60] sm:$0xff]  ;;  %v159_v60 = vld [vmem:[%s960_s2 + $0xf0] sm:$0xff]  ;;  %vm343_vm6 = vcmask 58368   ;;  %vm339_vm7 = vcmask 64512   ;;  %vm523_vm8 = vcmask 1041409  }
  0x10   :  { %v644_v57 = vpack.c.bf16 %v158_v55, %v157_v54  ;;  %v142_v59 = vld [vmem:[%s960_s2 + $0x68] sm:$0xff]  ;;  %v160_v61 = vld [vmem:[%s960_s2 + $0xf8] sm:$0xff]  ;;  %v143_v0 = vld [vmem:[%s960_s2 + $0x70] sm:$0xff]  ;;  %vm525_vm9 = vcmask 1042434   ;;  %vm527_vm10 = vcmask 1043459   ;;  %vm529_vm11 = vcmask 1044484  }
  0x11   :  { %76 = vrot.lane.b32.xlu1 %v74_v33, %s718_s12  ;;  %678 = vrot.lane.b32.xlu0 %v677_v42, %s719_s21  ;;  %v646_v62 = vpack.c.bf16 %v142_v59, %v141_v58  ;;  %v648_v63 = vpack.c.bf16 %v160_v61, %v159_v60  ;;  %v144_v1 = vld [vmem:[%s960_s2 + $0x78] sm:$0xff]  ;;  %v559_v4 = vld.sshfl [vmem:[%s958_s0] sm:$0x33 pattern:$0x76325410]  ;;  %vm531_vm12 = vcmask 1045509  }
  0x12   :  { %635 = vmatpush3.bf16.msra.mxu0 %v634_v43  ;;  %v650_v2 = vpack.c.bf16 %v144_v1, %v143_v0  ;;  %v35_v7 = vcombine.high %v559_v4, %v559_v4  ;;  %v560_v21 = vld.sshfl [vmem:[%s958_s0 + $0x2] sm:$0x33 pattern:$0x76325410]  ;;  %v246_v33 = vld [vmem:[%s962_s4 + $0x8] sm:$0xff]  ;;  %v247_v35 = vld [vmem:[%s962_s4 + $0x10] sm:$0xff] }
  0x13   :  { %637 = vmatprep.subr.bf16.mxu0 %v636_v44  ;;  %v107_v28 = vcombine.high %v560_v21, %v560_v21  ;;  %v245_v32 = vld [vmem:[%s962_s4] sm:$0xff]  ;;  %v248_v36 = vld [vmem:[%s962_s4 + $0x18] sm:$0xff]  ;;  %vm533_vm13 = vcmask 1046534   ;;  %vm535_vm14 = vcmask 1047559   ;;  %vm541_vm15 = vcmask 254976  }
  0x14   :  { %v652_v34 = vpack.c.bf16 %v246_v33, %v245_v32  ;;  %v656_v37 = vpack.c.bf16 %v248_v36, %v247_v35  ;;  %v561_v40 = vld [vmem:[%s961_s3] ss:$0 sm:$0xff]  ;;  %v123_v35 = vld [vmem:[%s959_s1 + $0x2] sm:$0xff] }
  0x15   :  { %88 = vrot.lane.b32.xlu1 %v87_v49, %s719_s21  ;;  %v562_v49 = vld [vmem:[%s963_s5] ss:$0 sm:$0xff] }
  0x16   :  { %639 = vmatpush3.bf16.msra.mxu0 %v638_v50  ;;  %653 = vmatprep.subr.bf16.mxu1 %v652_v34 }
  0x17   :  { %641 = vmatprep.subr.bf16.mxu0 %v640_v51  ;;  %655 = vmatpush3.bf16.msra.mxu1 %v652_v34 }
  0x18   :  { %657 = vmatprep.subr.bf16.mxu1 %v656_v37 }
  0x1a   :  { %643 = vmatpush3.bf16.msra.mxu0 %v642_v56 }
  0x1b   :  { %645 = vmatprep.subr.bf16.mxu0 %v644_v57  ;;  %659 = vmatpush3.bf16.msra.mxu1 %v656_v37 }
  0x1e   :  { %647 = vmatpush3.bf16.msra.mxu0 %v646_v62 }
  0x1f   :  { %649 = vmatprep.subr.bf16.mxu0 %v648_v63 }
  0x22   :  { %651 = vmatpush3.bf16.msra.mxu0 %v650_v2 }
  0x7b   :  { %v56_v3 = vpop.permute.xlu0 %55 }
  0x7f   :  { %v674_v5 = vpop.permute.xlu1 %673  ;;  %v669_v6 = vpop.permute.xlu0 %668 }
  0x80   :  { %v676_v9 = vunpack.i.h.bf16 %v674_v5  ;;  %v675_v10 = vunpack.i.l.bf16 %v674_v5  ;;  %v671_v11 = vunpack.i.h.bf16 %v669_v6  ;;  %v670_v12 = vunpack.i.l.bf16 %v669_v6 }
  0x81   :  { %v372_v6 = vsub.s32 1, %v770_v8 }
  0x82   :  { %v62_v13 = vsel %vm61_vm0, %v56_v3, %v670_v12  ;;  %v63_v14 = vsel %vm61_vm0, %v670_v12, %v671_v11  ;;  %v84_v17 = vsel %vm82_vm1, %v675_v10, %v676_v9 }
  0x83   :  { %v77_v15 = vpop.permute.xlu1 %76  ;;  %v679_v16 = vpop.permute.xlu0 %678  ;;  %v112_v18 = vsel %vm110_vm2, %v35_v7, %v63_v14  ;;  %v111_v23 = vsel %vm110_vm2, %v559_v4, %v62_v13  ;;  %v365_v7 = vsub.s32 0, %v770_v8  ;;  %v393_v13 = vsub.s32 4, %v770_v8 }
  0x84   :  { %v681_v19 = vunpack.i.h.bf16 %v679_v16  ;;  %v680_v20 = vunpack.i.l.bf16 %v679_v16  ;;  %v83_v22 = vsel %vm82_vm1, %v77_v15, %v675_v10  ;;  %v115_v25 = vsel %vm113_vm4, %v112_v18, %v84_v17 }
  0x85   :  { %v114_v30 = vsel %vm113_vm4, %v111_v23, %v83_v22  ;;  %v379_v14 = vsub.s32 2, %v770_v8  ;;  %v407_v17 = vsub.s32 6, %v770_v8  ;;  %v386_v18 = vsub.s32 3, %v770_v8 }
  0x86   :  { %v96_v24 = vsel %vm94_vm3, %v680_v20, %v681_v19  ;;  %v400_v22 = vsub.s32 5, %v770_v8 }
  0x87   :  { %v89_v26 = vpop.permute.xlu1 %88  ;;  %v118_v27 = vsel %vm116_vm5, %v115_v25, %v96_v24 }
  0x88   :  { %v95_v29 = vsel %vm94_vm3, %v89_v26, %v680_v20  ;;  %232 = vmatprep.mubr.f32.mxu0 %v118_v27  ;;  %v414_v26 = vsub.s32 7, %v770_v8  ;;  %v121_v8 = vld [vmem:[%s959_s1 + $0x1] sm:$0xff] }
  0x89   :  { %v117_v31 = vsel %vm116_vm5, %v114_v30, %v95_v29  ;;  %v119_v29 = vld [vmem:[%s959_s1] sm:$0xff]  ;;  %v120_v30 = vld [vmem:[%s959_s1 + $0x10] sm:$0xff] }
  0x8a   :  { %233 = vmatmul.mubr.f32.vlgmr.msra.gmra.mrb[0].mxu0 %v117_v31 }
  0x8b   :  { %237 = vmatprep.mubr.f32.mxu0 %v107_v28 }
  0x8e   :  { %238 = vmatmul.mubr.f32.gmra.mrb[2].mxu0 %v560_v21 }
 0x15d   :  { %v597_v38 = vpop.f32.mrb[0].mxu0 }
 0x15e   :  { %v598_v39 = vpop.f32.mrb[1].mxu0 }
 0x15f   :  { %v599_v41 = vadd.f32 %v598_v39, %v597_v38 }
 0x161   :  { %v600_v42 = vpop.f32.mrb[2].mxu0  ;;  %v235_v43 = vadd.f32 %v599_v41, %v561_v40 }
 0x162   :  { %v601_v44 = vpop.f32.mrb[3].mxu0 }
 0x163   :  { %v602_v45 = vadd.f32 %v601_v44, %v600_v42  ;;  %v243_v46 = vmax.f32 %v235_v43, 0.0 }
 0x165   :  { %v240_v47 = vadd.f32 %v602_v45, %v561_v40  ;;  %617 = vmatprep.mubr.msk.f32.mxu1 %vm94_vm3, %v243_v46  ;;  %v122_v46 = vld [vmem:[%s959_s1 + $0x11] sm:$0xff] }
 0x167   :  { %v244_v48 = vmax.f32 %v240_v47, 0.0  ;;  %v125_v47 = vld [vmem:[%s959_s1 + $0x3] sm:$0xff] }
 0x169   :  { %618 = vmatmul.mubr.msk.f32.vlgmr.msra.gmra.mrb[0].mxu1 %vm94_vm3, %v244_v48 }
 0x23c   :  { %v619_v50 = vpop.f32.mrb[0].mxu1 }
 0x23d   :  { %v334_v51 = vadd.f32 %v619_v50, %v562_v49  ;;  %v328_v52 = vpop.f32.mrb[1].mxu1 }
 0x23e   :  { %v329_v53 = vadd.f32 %v562_v49, %v328_v52 }
 0x23f   :  { %v338_v54 = vmax.f32 %v334_v51, 0.0 }
 0x240   :  { %v337_v55 = vmax.f32 %v329_v53, 0.0 }
 0x241   :  { %v344_v56 = vsel %vm343_vm6, %v338_v54, -inf }
 0x242   :  { %345 = vmax.xlane.f32.xlu1 %v344_v56  ;;  %v340_v57 = vsel %vm339_vm7, %v337_v55, -inf }
 0x243   :  { %341 = vmax.xlane.f32.xlu0 %v340_v57 }
 0x2cf   :  { %v346_v58 = vpop.xlane.xlu1 %345 }
 0x2d0   :  { %v348_v59 = vsub.f32 %v338_v54, %v346_v58  ;;  %v342_v60 = vpop.xlane.xlu0 %341 }
 0x2d1   :  { %v347_v61 = vsub.f32 %v337_v55, %v342_v60 }
 0x2d2   :  { %v351_v62 = vmul.f32 1.442695, %v348_v59 }
 0x2d3   :  { %v349_v63 = vmul.f32 1.442695, %v347_v61 }
 0x2d5   :  { %684 = vpow2.f32 %v349_v63  ;;  %v127_v63 = vld [vmem:[%s959_s1 + $0x4] sm:$0xff] }
 0x2d6   :  { %686 = vpow2.f32 %v351_v62  ;;  %v124_v62 = vld [vmem:[%s959_s1 + $0x12] sm:$0xff] }
 0x2df   :  { %v685_v0 = vpop.eup %684 }
 0x2e0   :  { %v353_v1 = vsel %vm339_vm7, %v685_v0, 0.0  ;;  %v687_v2 = vpop.eup %686 }
 0x2e1   :  { %354 = vadd.xlane.f32.xlu0 %v353_v1  ;;  %v356_v3 = vsel %vm343_vm6, %v687_v2, 0.0 }
 0x2e5   :  { %357 = vadd.xlane.f32.xlu0 %v356_v3 }
 0x36e   :  { %v355_v4 = vpop.xlane.xlu0 %354 }
 0x36f   :  { %688 = vrcp.f32 %v355_v4 }
 0x372   :  { %v358_v5 = vpop.xlane.xlu0 %357 }
 0x373   :  { %690 = vrcp.f32 %v358_v5 }
 0x379   :  { %v689_v9 = vpop.eup %688 }
 0x37a   :  { %v361_v10 = vmul.f32 %v689_v9, %v685_v0 }
 0x37c   :  { %v373_v11 = vrot.slane %v361_v10, %v372_v6  ;;  %v366_v12 = vrot.slane %v361_v10, %v365_v7  ;;  %v394_v15 = vrot.slane %v361_v10, %v393_v13  ;;  %v380_v16 = vrot.slane %v361_v10, %v379_v14  ;;  %v126_v14 = vld [vmem:[%s959_s1 + $0x13] sm:$0xff] }
 0x37d   :  { %v691_v19 = vpop.eup %690  ;;  %v408_v20 = vrot.slane %v361_v10, %v407_v17  ;;  %v387_v21 = vrot.slane %v361_v10, %v386_v18  ;;  %v401_v24 = vrot.slane %v361_v10, %v400_v22  ;;  %v415_v27 = vrot.slane %v361_v10, %v414_v26 }
 0x37e   :  { %375 = vbcast.lane.b32.xlu0 %v373_v11, 256  ;;  %368 = vbcast.lane.b32.xlu1 %v366_v12, 256  ;;  %v362_v23 = vmul.f32 %v691_v19, %v687_v2 }
 0x380   :  { %v422_v25 = vrot.slane %v362_v23, %v365_v7  ;;  %v429_v28 = vrot.slane %v362_v23, %v372_v6 }
 0x382   :  { %396 = vbcast.lane.b32.xlu0 %v394_v15, 256  ;;  %382 = vbcast.lane.b32.xlu1 %v380_v16, 256 }
 0x386   :  { %410 = vbcast.lane.b32.xlu0 %v408_v20, 256  ;;  %389 = vbcast.lane.b32.xlu1 %v387_v21, 256 }
 0x38a   :  { %403 = vbcast.lane.b32.xlu1 %v401_v24, 256  ;;  %424 = vbcast.lane.b32.xlu0 %v422_v25, 256 }
 0x38e   :  { %417 = vbcast.lane.b32.xlu1 %v415_v27, 256 }
 0x392   :  { %431 = vbcast.lane.b32.xlu1 %v429_v28, 256 }
 0x3f0   :  { %v369_v31 = vpop.permute.xlu1 %368  ;;  %v376_v32 = vpop.permute.xlu0 %375 }
 0x3f1   :  { %v433_v33 = vmul.f32 %v369_v31, %v119_v29  ;;  %v434_v34 = vmul.f32 %v376_v32, %v120_v30  ;;  %v128_v29 = vld [vmem:[%s959_s1 + $0x14] sm:$0xff]  ;;  %s720_s1 = smov [#allocation2]  }
 0x3f2   :  { %s548_s23 = sshll.u32 %s720_s1, 4  ;;  %s549_s23 = int_to_ptr.vmem [resolvable:$true] %s548_s23 }
 0x3f3   :  { %v443_v36 = vsel %vm94_vm3, %v433_v33, 0.0  ;;  %v450_v37 = vsel %vm94_vm3, %v434_v34, 0.0  ;;  %s692_s24 = scalar_lea.vmem %s549_s23, 256  ;;  %p697_p1 = scmp.lt.s32.totalorder %s549_s23, %s549_s23 }
 0x3f4   :  { %v444_v38 = vrot.slane %v443_v36, 4  ;;  %v451_v39 = vrot.slane %v450_v37, 4  ;;  %v383_v40 = vpop.permute.xlu1 %382  ;;  %v397_v41 = vpop.permute.xlu0 %396  ;;  %p693_p0 = scmp.ne.s32.totalorder %s549_s23, %s692_s24  ;;  %p698_p2 = scmp.lt.s32.totalorder %s692_s24, %s692_s24 }
 0x3f5   :  { %v435_v42 = vmul.f32 %v383_v40, %v121_v8  ;;  %v437_v43 = vmul.f32 %v397_v41, %v123_v35 }
 0x3f6   :  { %v445_v44 = vadd.f32 %v444_v38, %v443_v36  ;;  %v452_v45 = vadd.f32 %v451_v39, %v450_v37  ;;  %p699_p3 = por %p698_p2, %p697_p1 }
 0x3f7   :  { %v457_v48 = vsel %vm94_vm3, %v435_v42, 0.0  ;;  %v471_v49 = vsel %vm94_vm3, %v437_v43, 0.0 }
 0x3f8   :  { %v446_v50 = vrot.slane %v445_v44, 2  ;;  %v453_v51 = vrot.slane %v452_v45, 2  ;;  %v458_v52 = vrot.slane %v457_v48, 4  ;;  %v472_v53 = vrot.slane %v471_v49, 4  ;;  %v390_v54 = vpop.permute.xlu1 %389  ;;  %v411_v55 = vpop.permute.xlu0 %410  ;;  %p700_p4 = pnand %p699_p3, %p693_p0 }
 0x3f9   :  { %v436_v56 = vmul.f32 %v390_v54, %v122_v46  ;;  %v439_v57 = vmul.f32 %v411_v55, %v125_v47 }
 0x3fa   :  { %v447_v58 = vadd.f32 %v446_v50, %v445_v44  ;;  %v454_v59 = vadd.f32 %v453_v51, %v452_v45  ;;  %v459_v60 = vadd.f32 %v458_v52, %v457_v48  ;;  %v473_v61 = vadd.f32 %v472_v53, %v471_v49 }
 0x3fb   :  { %v464_v0 = vsel %vm94_vm3, %v436_v56, 0.0  ;;  %v485_v1 = vsel %vm94_vm3, %v439_v57, 0.0 }
 0x3fc   :  { %v460_v2 = vrot.slane %v459_v60, 2  ;;  %v474_v3 = vrot.slane %v473_v61, 2  ;;  %v404_v4 = vpop.permute.xlu1 %403  ;;  %v425_v5 = vpop.permute.xlu0 %424  ;;  %v465_v6 = vrot.slane %v464_v0, 4  ;;  %v486_v7 = vrot.slane %v485_v1, 4 }
 0x3fd   :  { %v438_v9 = vmul.f32 %v404_v4, %v124_v62  ;;  %v441_v10 = vmul.f32 %v425_v5, %v127_v63  ;;  %v448_v11 = vrot.slane %v447_v58, 1  ;;  %v455_v12 = vrot.slane %v454_v59, 1 }
 0x3fe   :  { %v461_v13 = vadd.f32 %v460_v2, %v459_v60  ;;  %v466_v15 = vadd.f32 %v465_v6, %v464_v0  ;;  %v487_v16 = vadd.f32 %v486_v7, %v485_v1  ;;  %v475_v23 = vadd.f32 %v474_v3, %v473_v61 }
 0x3ff   :  { %v478_v17 = vsel %vm94_vm3, %v438_v9, 0.0  ;;  %v499_v18 = vsel %vm94_vm3, %v441_v10, 0.0  ;;  %v449_v30 = vadd.f32 %v448_v11, %v447_v58  ;;  %v456_v31 = vadd.f32 %v455_v12, %v454_v59 }
 0x400   :  { %v462_v19 = vrot.slane %v461_v13, 1  ;;  %v479_v20 = vrot.slane %v478_v17, 4  ;;  %v500_v21 = vrot.slane %v499_v18, 4  ;;  %v418_v22 = vpop.permute.xlu1 %417  ;;  %v467_v24 = vrot.slane %v466_v15, 2 }
 0x401   :  { %v488_v25 = vrot.slane %v487_v16, 2  ;;  %v440_v26 = vmul.f32 %v418_v22, %v126_v14  ;;  %v476_v37 = vrot.slane %v475_v23, 1  ;;  %v524_v46 = vsel %vm523_vm8, %v456_v31, %v449_v30 }
 0x402   :  { %v480_v27 = vadd.f32 %v479_v20, %v478_v17  ;;  %v501_v28 = vadd.f32 %v500_v21, %v499_v18  ;;  %v468_v32 = vadd.f32 %v467_v24, %v466_v15  ;;  %v463_v34 = vadd.f32 %v462_v19, %v461_v13 }
 0x403   :  { %v492_v33 = vsel %vm94_vm3, %v440_v26, 0.0  ;;  %v489_v39 = vadd.f32 %v488_v25, %v487_v16  ;;  %v477_v51 = vadd.f32 %v476_v37, %v475_v23 }
 0x404   :  { %v481_v8 = vrot.slane %v480_v27, 2  ;;  %v493_v35 = vrot.slane %v492_v33, 4  ;;  %v432_v36 = vpop.permute.xlu1 %431  ;;  %v469_v38 = vrot.slane %v468_v32, 1  ;;  %v502_v42 = vrot.slane %v501_v28, 2 }
 0x405   :  { %v442_v40 = vmul.f32 %v432_v36, %v128_v29  ;;  %v526_v50 = vsel %vm525_vm9, %v463_v34, %v524_v46  ;;  %v490_v52 = vrot.slane %v489_v39, 1 }
 0x406   :  { %v482_v41 = vadd.f32 %v481_v8, %v480_v27  ;;  %v494_v43 = vadd.f32 %v493_v35, %v492_v33  ;;  %v470_v44 = vadd.f32 %v469_v38, %v468_v32  ;;  %v503_v55 = vadd.f32 %v502_v42, %v501_v28 }
 0x407   :  { %v506_v45 = vsel %vm94_vm3, %v442_v40, 0.0  ;;  %v491_v62 = vadd.f32 %v490_v52, %v489_v39 }
 0x408   :  { %v483_v47 = vrot.slane %v482_v41, 1  ;;  %v495_v48 = vrot.slane %v494_v43, 2  ;;  %v507_v49 = vrot.slane %v506_v45, 4  ;;  %v528_v53 = vsel %vm527_vm10, %v470_v44, %v526_v50 }
 0x409   :  { %v530_v58 = vsel %vm529_vm11, %v477_v51, %v528_v53  ;;  %v504_v63 = vrot.slane %v503_v55, 1 }
 0x40a   :  { %v484_v54 = vadd.f32 %v483_v47, %v482_v41  ;;  %v496_v56 = vadd.f32 %v495_v48, %v494_v43  ;;  %v508_v57 = vadd.f32 %v507_v49, %v506_v45 }
 0x40b   :  { %v505_v5 = vadd.f32 %v504_v63, %v503_v55 }
 0x40c   :  { %v497_v59 = vrot.slane %v496_v56, 1  ;;  %v509_v60 = vrot.slane %v508_v57, 2  ;;  %v532_v61 = vsel %vm531_vm12, %v484_v54, %v530_v58 }
 0x40d   :  { %v534_v2 = vsel %vm533_vm13, %v491_v62, %v532_v61 }
 0x40e   :  { %v498_v0 = vadd.f32 %v497_v59, %v496_v56  ;;  %v510_v1 = vadd.f32 %v509_v60, %v508_v57 }
 0x410   :  { %v511_v3 = vrot.slane %v510_v1, 1  ;;  %v536_v4 = vsel %vm535_vm14, %v498_v0, %v534_v2 }
 0x411   :  { %540 = vst.msk [vmem:[#allocation2] sm:$0xff] %vm94_vm3, %v536_v4 }
 0x412   :  { %v512_v6 = vadd.f32 %v511_v3, %v510_v1 }
 0x414   :  { %v537_v7 = vsel %vm523_vm8, %v512_v6, %v505_v5 }
 0x415   :  { %542 = vst.msk [vmem:[#allocation2 + $0x8] sm:$0x3] %vm541_vm15, %v537_v7 }
 0x416   :  { %703 = shalt.err (!%p700_p4)
}
 0x417   :  { %s704_s27 = scalar_lea.hbm %s964_s6, 256 }
 0x418   :  { %p705_p5 = scmp.ne.s32.totalorder %s964_s6, %s704_s27  ;;  %p708_p6 = scmp.lt.u32.totalorder %s704_s27, %s964_s6 }
 0x41a   :  { %p710_p7 = pnand %p708_p6, %p705_p5 }
 0x41c   :  { %713 = shalt.err (!%p710_p7)
}
 0x41d   :  { %s721_s3 = smov 128   ;;  %s722_s5 = smov 8  }
 0x41e   :  { %554 = dma.vmem_to_hbm [thread:$0]  %s549_s23, 256, %s964_s6, [#allocation3], %s721_s3, %s721_s3, %s722_s5  }
 0x41f   :  { %714 = dma.done.wait [#allocation3], 256  }
 0x420   :  { %715 = vsyncadd [#allocation3], 4294967040 }
 0x421   :  { %558 = vsyncpa [#allocation3], 1 }

</bundles_post_ra>
